<compile_context>
chip_gen: v7x
topology: tpu7x:2x2x1
jax: 0.10.0
libtpu: 0.0.40
codegen_flags: <defaults>
</compile_context>

<pallas_src>
import functools

import jax
import jax.numpy as jnp
from jax.experimental import pallas as pl
from jax.experimental.pallas import tpu as pltpu

_VMEM_LIMIT = 64 * 1024 * 1024  # bytes; <= v7x physical, > default scoped limit


# ----------------------------------------------------------------------------
# Pallas kernels
# ----------------------------------------------------------------------------
def _layernorm(v, g, b, eps=1e-5):
    mu = jnp.mean(v, axis=-1, keepdims=True)
    var = jnp.mean((v - mu) ** 2, axis=-1, keepdims=True)
    return (v - mu) * jax.lax.rsqrt(var + eps) * g + b


def _linear_kernel(x_ref, w_ref, b_ref, o_ref):
    # (tm, K) @ (K, N) + (1, N); bf16 MXU inputs, f32 accumulate.
    acc = jnp.dot(x_ref[...].astype(jnp.bfloat16), w_ref[...],
                  preferred_element_type=jnp.float32)
    o_ref[...] = (acc + b_ref[...]).astype(o_ref.dtype)


def pallas_linear(x, w, b, *, tm=256):
    """Row-tiled linear: x (M,K) f32, w (K,N) bf16, b (1,N) f32 -> (M,N) f32."""
    M, K = x.shape
    N = w.shape[1]
    tm = min(tm, M)
    return pl.pallas_call(
        _linear_kernel,
        out_shape=jax.ShapeDtypeStruct((M, N), jnp.float32),
        grid=(pl.cdiv(M, tm),),
        in_specs=[
            pl.BlockSpec((tm, K), lambda i: (i, 0)),
            pl.BlockSpec((K, N), lambda i: (0, 0)),
            pl.BlockSpec((1, N), lambda i: (0, 0)),
        ],
        out_specs=pl.BlockSpec((tm, N), lambda i: (i, 0)),
        compiler_params=pltpu.CompilerParams(
            dimension_semantics=("parallel",),
            vmem_limit_bytes=_VMEM_LIMIT),
    )(x, w, b)


def _block_kernel(x_ref, ln1g_ref, ln1b_ref, wqkv_ref, bqkv_ref, wo_ref, bo_ref,
                  ln2g_ref, ln2b_ref, w1_ref, b1_ref, w2_ref, b2_ref, o_ref,
                  *, num_heads):
    """One transformer block applied to the resident activation carry (o_ref).

    Grid = (batch_tiles, depth).  The output block index depends only on the batch
    axis, so o_ref stays in VMEM across the whole layer loop (carry pattern); it is
    seeded from x_ref at layer 0.
    """
    layer = pl.program_id(1)

    @pl.when(layer == 0)
    def _():
        o_ref[...] = x_ref[...]

    x = o_ref[...].astype(jnp.float32)                     # (Bt, S, D)
    Bt, S, D = x.shape
    nh = num_heads
    hd = D // nh
    rows = Bt * S
    scale = 1.0 / float(hd) ** 0.5

    x2 = x.reshape(rows, D)

    # --- Multi-head self-attention (pre-LN), heads batched in one einsum stream ---
    h = _layernorm(x2, ln1g_ref[...], ln1b_ref[...])
    qkv = jnp.dot(h.astype(jnp.bfloat16), wqkv_ref[...],
                  preferred_element_type=jnp.float32) + bqkv_ref[...]   # (rows, 3D)

    def split_heads(t):  # (rows, D) -> (Bt*nh, S, hd)
        return (t.reshape(Bt, S, nh, hd)
                 .transpose(0, 2, 1, 3)
                 .reshape(Bt * nh, S, hd))

    q = split_heads(qkv[:, 0:D]).astype(jnp.bfloat16)
    k = split_heads(qkv[:, D:2 * D]).astype(jnp.bfloat16)
    v = split_heads(qkv[:, 2 * D:3 * D]).astype(jnp.bfloat16)

    s = jnp.einsum("hqd,hkd->hqk", q, k,
                   preferred_element_type=jnp.float32) * scale          # (Bt*nh,S,S)
    s = s - jnp.max(s, axis=-1, keepdims=True)
    p = jnp.exp(s)
    p = p * pl.reciprocal(jnp.sum(p, axis=-1, keepdims=True), approx=True)
    ctx = jnp.einsum("hqk,hkd->hqd", p.astype(jnp.bfloat16), v,
                     preferred_element_type=jnp.float32)                # (Bt*nh,S,hd)
    attn = (ctx.reshape(Bt, nh, S, hd)
               .transpose(0, 2, 1, 3)
               .reshape(rows, D))
    attn = jnp.dot(attn.astype(jnp.bfloat16), wo_ref[...],
                   preferred_element_type=jnp.float32) + bo_ref[...]
    x2 = x2 + attn

    # --- MLP (pre-LN) ---
    h2 = _layernorm(x2, ln2g_ref[...], ln2b_ref[...])
    m = jnp.dot(h2.astype(jnp.bfloat16), w1_ref[...],
                preferred_element_type=jnp.float32) + b1_ref[...]
    # TODO(synk): PyTorch nn.GELU default is the exact erf form; tanh approximation used here.
    m = jax.nn.gelu(m, approximate=True)
    m = jnp.dot(m.astype(jnp.bfloat16), w2_ref[...],
                preferred_element_type=jnp.float32) + b2_ref[...]
    x2 = x2 + m

    o_ref[...] = x2.reshape(Bt, S, D).astype(o_ref.dtype)


def _pick_batch_tile(B, max_bt=8):
    for bt in range(min(B, max_bt), 0, -1):
        if B % bt == 0:
            return bt
    return 1


def pallas_transformer_stack(x, stack, num_heads):
    """Run all `depth` transformer blocks in one pallas_call.

    Grid = (batch_tiles, depth): batch 'parallel', layer 'arbitrary'.  Per-layer
    weights are stacked along a leading depth axis and selected by the layer index,
    so BlockSpec pipelining prefetches layer L+1 weights while layer L computes.
    """
    B, S, D = x.shape
    depth = stack["wqkv"].shape[0]
    Mh = stack["w1"].shape[2]
    Bt = _pick_batch_tile(B)
    nb = B // Bt
    kern = functools.partial(_block_kernel, num_heads=num_heads)

    def wspec(shape):
        # Stacked per-layer parameter: block covers one layer (squeezed) fully.
        return pl.BlockSpec((None,) + shape, lambda b, l: (l, 0, 0))

    return pl.pallas_call(
        kern,
        out_shape=jax.ShapeDtypeStruct((B, S, D), x.dtype),
        grid=(nb, depth),
        in_specs=[
            pl.BlockSpec((Bt, S, D), lambda b, l: (b, 0, 0)),
            wspec((1, D)), wspec((1, D)),
            wspec((D, 3 * D)), wspec((1, 3 * D)),
            wspec((D, D)), wspec((1, D)),
            wspec((1, D)), wspec((1, D)),
            wspec((D, Mh)), wspec((1, Mh)),
            wspec((Mh, D)), wspec((1, D)),
        ],
        out_specs=pl.BlockSpec((Bt, S, D), lambda b, l: (b, 0, 0)),
        compiler_params=pltpu.CompilerParams(
            dimension_semantics=("parallel", "arbitrary"),
            vmem_limit_bytes=_VMEM_LIMIT),
    )(x, stack["ln1_g"], stack["ln1_b"], stack["wqkv"], stack["bqkv"],
      stack["wo"], stack["bo"], stack["ln2_g"], stack["ln2_b"],
      stack["w1"], stack["b1"], stack["w2"], stack["b2"])


def _head_kernel(x_ref, g_ref, b_ref, w_ref, bias_ref, o_ref):
    # final LayerNorm on cls token + classifier Linear (lane-dense padded output)
    x = x_ref[...].astype(jnp.float32)                      # (B, D)
    h = _layernorm(x, g_ref[...], b_ref[...])
    logits = jnp.dot(h.astype(jnp.bfloat16), w_ref[...],
                     preferred_element_type=jnp.float32) + bias_ref[...]
    o_ref[...] = logits.astype(o_ref.dtype)


def pallas_head(cls_tok, ln_g, ln_b, w, b):
    B, D = cls_tok.shape
    NC = w.shape[1]
    NCp = ((NC + 127) // 128) * 128                         # lane-dense output slab
    w_p = jnp.zeros((D, NCp), w.dtype).at[:, :NC].set(w)
    b_p = jnp.zeros((1, NCp), b.dtype).at[:, :NC].set(b)
    logits = pl.pallas_call(
        _head_kernel,
        out_shape=jax.ShapeDtypeStruct((B, NCp), jnp.float32),
        grid=(1,),
        in_specs=[
            pl.BlockSpec((B, D), lambda i: (0, 0)),
            pl.BlockSpec((1, D), lambda i: (0, 0)),
            pl.BlockSpec((1, D), lambda i: (0, 0)),
            pl.BlockSpec((D, NCp), lambda i: (0, 0)),
            pl.BlockSpec((1, NCp), lambda i: (0, 0)),
        ],
        out_specs=pl.BlockSpec((B, NCp), lambda i: (0, 0)),
        compiler_params=pltpu.CompilerParams(vmem_limit_bytes=_VMEM_LIMIT),
    )(cls_tok, ln_g, ln_b, w_p, b_p)
    return logits[:, :NC]


# ----------------------------------------------------------------------------
# JAX glue: patchify, parameter construction, forward
# ----------------------------------------------------------------------------
def patchify(x, p):
    # 'b c (h p1) (w p2) -> b (h w) (p1 p2 c)'
    B, C, H, W = x.shape
    x = x.reshape(B, C, H // p, p, W // p, p)
    x = x.transpose(0, 2, 4, 3, 5, 1)
    return x.reshape(B, (H // p) * (W // p), p * p * C)


def init_params(key, *, in_chans, patch, img, dim, depth, heads, mlp_dim, num_classes):
    patch_dim = patch * patch * in_chans
    seq = (img // patch) ** 2 + 1
    std = 0.02
    keys = iter(jax.random.split(key, 8 + 4 * depth))

    def nrm(shape, dtype=jnp.float32):
        return (std * jax.random.normal(next(keys), shape, jnp.float32)).astype(dtype)

    params = {
        "patch": patch,
        "heads": heads,
        # matmul weights stored in bf16 (MXU-native); biases / LN params stay f32
        "embed_w": nrm((patch_dim, dim), jnp.bfloat16),
        "embed_b": jnp.zeros((1, dim), jnp.float32),
        "cls": nrm((1, 1, dim)),
        "pos": nrm((1, seq, dim)),
        "final_ln_g": jnp.ones((1, dim), jnp.float32),
        "final_ln_b": jnp.zeros((1, dim), jnp.float32),
        "head_w": nrm((dim, num_classes), jnp.bfloat16),
        "head_b": jnp.zeros((1, num_classes), jnp.float32),
    }
    wqkv, wo, w1, w2 = [], [], [], []
    for _ in range(depth):
        wqkv.append(nrm((dim, 3 * dim), jnp.bfloat16))
        wo.append(nrm((dim, dim), jnp.bfloat16))
        w1.append(nrm((dim, mlp_dim), jnp.bfloat16))
        w2.append(nrm((mlp_dim, dim), jnp.bfloat16))
    params["stack"] = {
        "ln1_g": jnp.ones((depth, 1, dim), jnp.float32),
        "ln1_b": jnp.zeros((depth, 1, dim), jnp.float32),
        "wqkv": jnp.stack(wqkv),
        "bqkv": jnp.zeros((depth, 1, 3 * dim), jnp.float32),
        "wo": jnp.stack(wo),
        "bo": jnp.zeros((depth, 1, dim), jnp.float32),
        "ln2_g": jnp.ones((depth, 1, dim), jnp.float32),
        "ln2_b": jnp.zeros((depth, 1, dim), jnp.float32),
        "w1": jnp.stack(w1),
        "b1": jnp.zeros((depth, 1, mlp_dim), jnp.float32),
        "w2": jnp.stack(w2),
        "b2": jnp.zeros((depth, 1, dim), jnp.float32),
    }
    return params


def moco_vit_classifier_forward(x, params):
    # x: (B, C, H, W) NCHW, same as PyTorch
    patches = patchify(x, params["patch"])                   # (B, N, P*P*C)
    B, N, Pd = patches.shape
    D = params["cls"].shape[-1]

    emb = pallas_linear(patches.reshape(B * N, Pd),
                        params["embed_w"], params["embed_b"]).reshape(B, N, D)

    cls = jnp.broadcast_to(params["cls"], (B, 1, D))
    h = jnp.concatenate([cls, emb], axis=1) + params["pos"]   # (B, S, D), f32

    h = pallas_transformer_stack(h, params["stack"], params["heads"])

    cls_tok = h[:, 0, :]                                      # (B, D)
    logits = pallas_head(cls_tok, params["final_ln_g"], params["final_ln_b"],
                         params["head_w"], params["head_b"])
    return logits                                             # (B, num_classes)


if __name__ == "__main__":
    B, C, H, W = 2, 3, 16, 16
    PATCH, DIM, DEPTH, HEADS, MLP_DIM, NUM_CLASSES = 4, 32, 2, 4, 64, 10

    root = jax.random.PRNGKey(0)
    kx, kp = jax.random.split(root)
    x = jax.random.normal(kx, (B, C, H, W), jnp.float32)
    params = init_params(kp, in_chans=C, patch=PATCH, img=H, dim=DIM, depth=DEPTH,
                         heads=HEADS, mlp_dim=MLP_DIM, num_classes=NUM_CLASSES)

    logits = moco_vit_classifier_forward(x, params)
    logits = jax.block_until_ready(logits)
    assert logits.shape == (B, NUM_CLASSES), logits.shape
    assert bool(jnp.all(jnp.isfinite(logits)))
    print("KERNEL_OK")
</pallas_src>

<mosaic_0001>
module attributes {stable_mosaic.version = 11 : i64} {
  func.func @_linear_kernel(%arg0: i32, %arg1: memref<32x48xf32, #tpu.memory_space<vmem>>, %arg2: memref<48x32xbf16, #tpu.memory_space<vmem>>, %arg3: memref<1x32xf32, #tpu.memory_space<vmem>>, %arg4: memref<32x32xf32, #tpu.memory_space<vmem>>) attributes {dimension_semantics = [#tpu.dimension_semantics<parallel>], iteration_bounds = array<i64: 1>, scalar_prefetch = 0 : i64, scratch_operands = 0 : i64, tpu.core_type = #tpu.core_type<tc>, window_params = [{transform_indices = @transform_0, window_bounds = array<i64: 32, 48>}, {pipeline_mode = #tpu.pipeline_mode<synchronous>, transform_indices = @transform_1, window_bounds = array<i64: 48, 32>}, {pipeline_mode = #tpu.pipeline_mode<synchronous>, transform_indices = @transform_2, window_bounds = array<i64: 1, 32>}, {transform_indices = @transform_3, window_bounds = array<i64: 32, 32>}]} {
    %c0 = arith.constant 0 : index
    %c0_0 = arith.constant 0 : index
    %0 = vector.load %arg1[%c0, %c0_0] : memref<32x48xf32, #tpu.memory_space<vmem>>, vector<32x48xf32>
    %1 = arith.truncf %0 : vector<32x48xf32> to vector<32x48xbf16>
    %c0_1 = arith.constant 0 : index
    %c0_2 = arith.constant 0 : index
    %2 = vector.load %arg2[%c0_1, %c0_2] : memref<48x32xbf16, #tpu.memory_space<vmem>>, vector<48x32xbf16>
    %cst = arith.constant dense<0.000000e+00> : vector<32x32xf32>
    %3 = tpu.matmul %1, %2, %cst {dimension_numbers = #tpu.dot_dimension_numbers<[1], [0], [0], [1], [0, 0, 1, 1], [], []>} : vector<32x48xbf16>, vector<48x32xbf16>, vector<32x32xf32> -> vector<32x32xf32>
    %c0_3 = arith.constant 0 : index
    %c0_4 = arith.constant 0 : index
    %4 = vector.load %arg3[%c0_3, %c0_4] : memref<1x32xf32, #tpu.memory_space<vmem>>, vector<1x32xf32>
    %5 = vector.broadcast %4 : vector<1x32xf32> to vector<32x32xf32>
    %6 = arith.addf %3, %5 : vector<32x32xf32>
    %c0_5 = arith.constant 0 : index
    %c0_6 = arith.constant 0 : index
    %7 = vector.load %arg4[%c0_5, %c0_6] : memref<32x32xf32, #tpu.memory_space<vmem>>, vector<32x32xf32>
    tpu.vector_store %arg4[%c0_5, %c0_6], %6 {strides = array<i32>} : memref<32x32xf32, #tpu.memory_space<vmem>>, vector<32x32xf32>,
    return
  }
  func.func @transform_0(%arg0: i32) -> (i32, i32) {
    %c0_i32 = arith.constant 0 : i32
    %c0_i32_0 = arith.constant 0 : i32
    return %arg0, %c0_i32 : i32, i32
  }
  func.func @transform_1(%arg0: i32) -> (i32, i32) {
    %c0_i32 = arith.constant 0 : i32
    %c0_i32_0 = arith.constant 0 : i32
    %c0_i32_1 = arith.constant 0 : i32
    return %c0_i32, %c0_i32_0 : i32, i32
  }
  func.func @transform_2(%arg0: i32) -> (i32, i32) {
    %c0_i32 = arith.constant 0 : i32
    %c0_i32_0 = arith.constant 0 : i32
    %c0_i32_1 = arith.constant 0 : i32
    return %c0_i32, %c0_i32_0 : i32, i32
  }
  func.func @transform_3(%arg0: i32) -> (i32, i32) {
    %c0_i32 = arith.constant 0 : i32
    %c0_i32_0 = arith.constant 0 : i32
    return %arg0, %c0_i32 : i32, i32
  }
}

</mosaic_0001>

<bundles_post_ra>
// kernel: tpu_custom_call.1
= control target key start
LH: loop header
LB: loop body
LE: loop exit
PB: predicated region body
PF: predicated region fallthrough
CT: control target
= control target key end

     0   :  { %8 = vsyncpa [#allocation3], 0  ;;  %s379_s0 = inlined_call_operand.hbm [shape: f32[32,48], index: 0, kind: input, shape index: {}]   ;;  %s380_s1 = inlined_call_operand.hbm [shape: bf16[48,32], index: 1, kind: input, shape index: {}]   ;;  %s381_s2 = inlined_call_operand.hbm [shape: f32[1,32], index: 2, kind: input, shape index: {}]   ;;  %s382_s3 = inlined_call_operand.hbm [shape: f32[32,32], index: 3, kind: output, shape index: {}]  }
   0x1   :  { %9 = vsyncpa [#allocation6], 0 }
   0x2   :  { %10 = vsyncpa [#allocation4], 0  ;;  %s297_s12 = smov [#allocation5]   ;;  %s203_s16 = scalar_lea.hbm %s380_s1, 384 }
   0x3   :  { %s28_s13 = sshll.u32 %s297_s12, 4  ;;  %p204_p0 = scmp.ne.s32.totalorder %s380_s1, %s203_s16  ;;  %s29_s13 = int_to_ptr.vmem [resolvable:$true] %s28_s13 }
   0x4   :  { %p207_p1 = scmp.lt.u32.totalorder %s203_s16, %s380_s1 }
   0x6   :  { %p209_p2 = pnand %p207_p1, %p204_p0 }
   0x8   :  { %212 = shalt.err (!%p209_p2)
}
   0x9   :  { %s213_s21 = scalar_lea.vmem %s29_s13, 384  ;;  %p218_p4 = scmp.lt.s32.totalorder %s29_s13, %s29_s13 }
   0xa   :  { %p214_p3 = scmp.ne.s32.totalorder %s29_s13, %s213_s21  ;;  %p219_p5 = scmp.lt.s32.totalorder %s213_s21, %s213_s21 }
   0xc   :  { %p220_p6 = por %p219_p5, %p218_p4 }
   0xe   :  { %p221_p7 = pnand %p220_p6, %p214_p3 }
  0x10   :  { %224 = shalt.err (!%p221_p7)
}
  0x11   :  { %s298_s22 = smov 64   ;;  %s299_s23 = smov 4  }
  0x12   :  { %34 = dma.hbm_to_vmem [thread:$0]  %s380_s1, 384, %s29_s13, [#allocation6], %s298_s22, %s298_s22, %s299_s23  }
  0x13   :  { %s300_s26 = smov [#allocation2]   ;;  %s225_s30 = scalar_lea.hbm %s379_s0, 512 }
  0x14   :  { %s16_s27 = sshll.u32 %s300_s26, 4  ;;  %p226_p8 = scmp.ne.s32.totalorder %s379_s0, %s225_s30  ;;  %s17_s27 = int_to_ptr.vmem [resolvable:$true] %s16_s27 }
  0x15   :  { %p229_p9 = scmp.lt.u32.totalorder %s225_s30, %s379_s0 }
  0x17   :  { %p231_p10 = pnand %p229_p9, %p226_p8 }
  0x19   :  { %234 = shalt.err (!%p231_p10)
}
  0x1a   :  { %s235_s8 = scalar_lea.vmem %s17_s27, 512  ;;  %p240_p12 = scmp.lt.s32.totalorder %s17_s27, %s17_s27 }
  0x1b   :  { %p236_p11 = scmp.ne.s32.totalorder %s17_s27, %s235_s8  ;;  %p241_p13 = scmp.lt.s32.totalorder %s235_s8, %s235_s8 }
  0x1d   :  { %p242_p0 = por %p241_p13, %p240_p12 }
  0x1f   :  { %p243_p1 = pnand %p242_p0, %p236_p11 }
  0x21   :  { %246 = shalt.err (!%p243_p1)
}
  0x22   :  { %s301_s1 = smov 128   ;;  %s302_s9 = smov 8  }
  0x23   :  { %22 = dma.hbm_to_vmem [thread:$0]  %s379_s0, 512, %s17_s27, [#allocation3], %s301_s1, %s301_s1, %s302_s9  }
  0x24   :  { %s303_s12 = smov [#allocation7]   ;;  %s247_s16 = scalar_lea.hbm %s381_s2, 16 }
  0x25   :  { %s41_s13 = sshll.u32 %s303_s12, 4  ;;  %p248_p2 = scmp.ne.s32.totalorder %s381_s2, %s247_s16  ;;  %s42_s13 = int_to_ptr.vmem [resolvable:$true] %s41_s13 }
  0x26   :  { %p251_p3 = scmp.lt.u32.totalorder %s247_s16, %s381_s2 }
  0x28   :  { %p253_p4 = pnand %p251_p3, %p248_p2 }
  0x2a   :  { %256 = shalt.err (!%p253_p4)
}
  0x2b   :  { %s257_s21 = scalar_lea.vmem %s42_s13, 16  ;;  %s261_s0 = scalar_lea.vmem %s42_s13, 32 }
  0x2c   :  { %p258_p5 = scmp.ne.s32.totalorder %s42_s13, %s257_s21  ;;  %p262_p6 = scmp.lt.s32.totalorder %s42_s13, %s42_s13 }
  0x2d   :  { %p263_p7 = scmp.lt.s32.totalorder %s261_s0, %s257_s21 }
  0x2f   :  { %p264_p8 = por %p263_p7, %p262_p6 }
  0x31   :  { %p265_p9 = pnand %p264_p8, %p258_p5 }
  0x33   :  { %268 = shalt.err (!%p265_p9)
}
  0x34   :  { %44 = dma.hbm_to_vmem [thread:$0]  %s381_s2, 16, %s42_s13, [#allocation6]  }
  0x35   :  { %291 = dma.done.wait [#allocation3], 512  }
  0x36   :  { %292 = vsyncadd [#allocation3], 4294966784 }
  0x37   :  { %293 = dma.done.wait [#allocation6], 400  }
  0x38   :  { %294 = vsyncadd [#allocation6], 4294966896  ;;  %v200_v0 = vld [vmem:[#allocation5] sm:$0xff]   ;;  %v201_v1 = vld [vmem:[#allocation5 + $0x8] sm:$0xff]   ;;  %vm92_vm0 = vcmask 392192   ;;  %vm148_vm1 = vcmask 261120  }
  0x39   :  { %182 = vmatprep.subr.bf16.mxu0 %v200_v0  ;;  %v55_v2 = vld [vmem:[#allocation2] sm:$0xff]  ;;  %v56_v3 = vld [vmem:[#allocation2 + $0x8] sm:$0xff]  ;;  %v202_v4 = vld [vmem:[#allocation5 + $0x10] sm:$0xff]   ;;  %s304_s2 = smov [#allocation8]  }
  0x3a   :  { %183 = vmatpush3.bf16.msra.mxu0 %v200_v0  ;;  %v59_v5 = vpack.c.bf16 %v56_v3, %v55_v2  ;;  %v57_v6 = vld [vmem:[#allocation2 + $0x10] sm:$0xff]  ;;  %v58_v7 = vld [vmem:[#allocation2 + $0x18] sm:$0xff]  ;;  %s158_s24 = sshll.u32 %s304_s2, 4  ;;  %s159_s24 = int_to_ptr.vmem [resolvable:$true] %s158_s24 }
  0x3b   :  { %184 = vmatprep.subr.bf16.mxu0 %v201_v1  ;;  %v60_v8 = vpack.c.bf16 %v58_v7, %v57_v6  ;;  %v171_v9 = vld [vmem:[#allocation7] ss:$0 sm:$0xff]  ;;  %s269_s25 = scalar_lea.vmem %s159_s24, 512  ;;  %p274_p11 = scmp.lt.s32.totalorder %s159_s24, %s159_s24 }
  0x3c   :  { %188 = vmatprep.mubr.msk.bf16.mxu0 %vm92_vm0, %v59_v5  ;;  %p270_p10 = scmp.ne.s32.totalorder %s159_s24, %s269_s25  ;;  %p275_p12 = scmp.lt.s32.totalorder %s269_s25, %s269_s25 }
  0x3e   :  { %185 = vmatpush3.bf16.msra.mxu0 %v201_v1  ;;  %p276_p13 = por %p275_p12, %p274_p11 }
  0x3f   :  { %186 = vmatprep.subr.bf16.mxu0 %v202_v4 }
  0x40   :  { %p277_p0 = pnand %p276_p13, %p270_p10 }
  0x42   :  { %187 = vmatpush3.bf16.msra.mxu0 %v202_v4 }
  0x45   :  { %189 = vmatmul.mubr.msk.bf16.vlgmr.msra.gmra.mrb[0].mxu0 %vm92_vm0, %v60_v8 }
 0x118   :  { %v190_v10 = vpop.f32.mrb[0].mxu0 }
 0x119   :  { %v142_v11 = vadd.f32 %v190_v10, %v171_v9  ;;  %v133_v12 = vpop.f32.mrb[1].mxu0 }
 0x11a   :  { %v134_v13 = vadd.f32 %v171_v9, %v133_v12  ;;  %v191_v14 = vpop.f32.mrb[2].mxu0 }
 0x11b   :  { %151 = vst.msk [vmem:[#allocation8 + $0x10] sm:$0xff] %vm148_vm1, %v142_v11  ;;  %v145_v15 = vadd.f32 %v191_v14, %v171_v9  ;;  %v136_v16 = vpop.f32.mrb[3].mxu0 }
 0x11c   :  { %149 = vst.msk [vmem:[#allocation8] sm:$0xff] %vm148_vm1, %v134_v13  ;;  %v137_v17 = vadd.f32 %v171_v9, %v136_v16 }
 0x11d   :  { %152 = vst.msk [vmem:[#allocation8 + $0x18] sm:$0xff] %vm148_vm1, %v145_v15 }
 0x11e   :  { %150 = vst.msk [vmem:[#allocation8 + $0x8] sm:$0xff] %vm148_vm1, %v137_v17 }
 0x11f   :  { %280 = shalt.err (!%p277_p0)
}
 0x120   :  { %s281_s28 = scalar_lea.hbm %s382_s3, 512 }
 0x121   :  { %p282_p1 = scmp.ne.s32.totalorder %s382_s3, %s281_s28  ;;  %p285_p2 = scmp.lt.u32.totalorder %s281_s28, %s382_s3 }
 0x123   :  { %p287_p3 = pnand %p285_p2, %p282_p1 }
 0x125   :  { %290 = shalt.err (!%p287_p3)
}
 0x126   :  { %164 = dma.vmem_to_hbm [thread:$0]  %s159_s24, 512, %s382_s3, [#allocation4], %s301_s1, %s301_s1, %s302_s9  }
 0x127   :  { %295 = dma.done.wait [#allocation4], 512  }
 0x128   :  { %296 = vsyncadd [#allocation4], 4294966784 }
 0x129   :  { %168 = vsyncpa [#allocation3], 1 }
 0x12a   :  { %169 = vsyncpa [#allocation6], 1 }
 0x12b   :  { %170 = vsyncpa [#allocation4], 1 }

</bundles_post_ra>
